<compile_context>
chip_gen: v5e
topology: v5e:2x2
jax: 0.10.0
libtpu: 0.0.40
codegen_flags: <defaults>
</compile_context>

<pallas_src>
import math

import jax
import jax.numpy as jnp
from jax.experimental import pallas as pl
from jax.experimental.pallas import tpu as pltpu


def _round_up(x: int, m: int) -> int:
    return ((x + m - 1) // m) * m


def dqn_kernel(x_ref, w1_ref, b1_ref, w2_ref, b2_ref, o_ref):
    # x_ref:  (TB, D)   native input dtype (cast to f32 in-kernel = x.float())
    # w1_ref: (D, H)    f32, VMEM resident across the whole grid
    # b1_ref: (1, H)    f32
    # w2_ref: (H, A)    f32
    # b2_ref: (1, A)    f32
    # o_ref:  (TB, A)   f32 Q-values
    x = x_ref[...].astype(jnp.float32)
    h = jnp.dot(x, w1_ref[...], preferred_element_type=jnp.float32) + b1_ref[...]
    y = jnp.dot(h, w2_ref[...], preferred_element_type=jnp.float32) + b2_ref[...]
    o_ref[...] = y.astype(o_ref.dtype)


def _choose_batch_tile(B: int, itemsize: int, cap: int = 512) -> int:
    # Packed-sublane count of the input dtype: 8 rows for 32-bit, 16 for
    # 16-bit, 32 for 8-bit inputs.
    sub = max(8, 32 // max(itemsize, 1))
    if B <= sub:
        return B  # single block; block row-dim equals the full array dim.
    # Aim for >= 2 grid steps (both v7x TensorCores get work) while capping
    # the tile so VMEM stays well inside the default scoped limit even on
    # v5e (double-buffered f32 x tile: 2 * 512 * D * 4 B = 4 MB for D=1024).
    return min(cap, _round_up(pl.cdiv(B, 2), sub))


def dqn_forward(x, w1, b1, w2, b2):
    """Forward pass of the DQN: Flatten -> Linear(D,32) -> Linear(32,A).

    x:  (B, *data_shape), any dtype (cast to float32 inside the kernel).
    w1: (D, H), b1: (1, H), w2: (H, A), b2: (1, A)   -- (in, out) layout.
    Returns: (B, A) float32 Q-values.
    """
    B = x.shape[0]
    D = math.prod(x.shape[1:])          # host-side int, no device sync
    H = w1.shape[1]
    A = w2.shape[1]

    x2d = x.reshape(B, D)               # Flatten: pure layout glue.

    TB = _choose_batch_tile(B, jnp.dtype(x.dtype).itemsize)
    grid = (pl.cdiv(B, TB),)            # partial last block masked by Pallas;
                                        # only in-range output rows are written.

    return pl.pallas_call(
        dqn_kernel,
        out_shape=jax.ShapeDtypeStruct((B, A), jnp.float32),
        grid=grid,
        in_specs=[
            # x tiles stream over the batch axis (software-pipelined DMA).
            pl.BlockSpec((TB, D), lambda i: (i, 0)),
            # Weights / biases: same block every step -> fetched once, resident.
            pl.BlockSpec((D, H), lambda i: (0, 0)),
            pl.BlockSpec((1, H), lambda i: (0, 0)),
            pl.BlockSpec((H, A), lambda i: (0, 0)),
            pl.BlockSpec((1, A), lambda i: (0, 0)),
        ],
        out_specs=pl.BlockSpec((TB, A), lambda i: (i, 0)),
        compiler_params=pltpu.CompilerParams(
            # Batch axis is embarrassingly parallel -> shards across v7x's 2 TCs.
            dimension_semantics=("parallel",),
        ),
    )(x2d, w1, b1, w2, b2)


if __name__ == "__main__":
    # Shapes consistent with the module: data_shape = (4, 16, 16), actions = 8.
    B = 2
    data_shape = (4, 16, 16)
    D = 4 * 16 * 16          # torch.prod(torch.tensor(data_shape)) = 1024
    H = 32                   # hidden width of the first Linear
    A = 8                    # actions_dimension

    key = jax.random.PRNGKey(0)
    kx, k1, k2, k3, k4 = jax.random.split(key, 5)

    # Deterministic synthetic parameters (Linear weights stored as (in, out)).
    x = jax.random.normal(kx, (B,) + data_shape, dtype=jnp.float32)
    w1 = jax.random.normal(k1, (D, H), dtype=jnp.float32) * (1.0 / jnp.sqrt(D))
    b1 = jax.random.normal(k2, (1, H), dtype=jnp.float32) * 0.01
    w2 = jax.random.normal(k3, (H, A), dtype=jnp.float32) * (1.0 / jnp.sqrt(H))
    b2 = jax.random.normal(k4, (1, A), dtype=jnp.float32) * 0.01

    y = dqn_forward(x, w1, b1, w2, b2)
    y = jax.block_until_ready(y)

    # Cross-check against the plain-JAX reference of the module's math.
    x2d = x.astype(jnp.float32).reshape(B, D)
    y_ref = (x2d @ w1 + b1) @ w2 + b2
    assert y.shape == (B, A)
    assert jnp.allclose(y, y_ref, atol=1e-4, rtol=1e-4)

    print("KERNEL_OK")
</pallas_src>

<mosaic_0001>
module attributes {stable_mosaic.version = 11 : i64} {
  func.func @dqn_kernel(%arg0: i32, %arg1: memref<2x1024xf32, #tpu.memory_space<vmem>>, %arg2: memref<1024x32xf32, #tpu.memory_space<vmem>>, %arg3: memref<1x32xf32, #tpu.memory_space<vmem>>, %arg4: memref<32x8xf32, #tpu.memory_space<vmem>>, %arg5: memref<1x8xf32, #tpu.memory_space<vmem>>, %arg6: memref<2x8xf32, #tpu.memory_space<vmem>>) attributes {dimension_semantics = [#tpu.dimension_semantics<parallel>], iteration_bounds = array<i64: 1>, scalar_prefetch = 0 : i64, scratch_operands = 0 : i64, tpu.core_type = #tpu.core_type<tc>, window_params = [{transform_indices = @transform_0, window_bounds = array<i64: 2, 1024>}, {pipeline_mode = #tpu.pipeline_mode<synchronous>, transform_indices = @transform_1, window_bounds = array<i64: 1024, 32>}, {pipeline_mode = #tpu.pipeline_mode<synchronous>, transform_indices = @transform_2, window_bounds = array<i64: 1, 32>}, {pipeline_mode = #tpu.pipeline_mode<synchronous>, transform_indices = @transform_3, window_bounds = array<i64: 32, 8>}, {pipeline_mode = #tpu.pipeline_mode<synchronous>, transform_indices = @transform_4, window_bounds = array<i64: 1, 8>}, {transform_indices = @transform_5, window_bounds = array<i64: 2, 8>}]} {
    %c0 = arith.constant 0 : index
    %c0_0 = arith.constant 0 : index
    %0 = vector.load %arg1[%c0, %c0_0] : memref<2x1024xf32, #tpu.memory_space<vmem>>, vector<2x1024xf32>
    %c0_1 = arith.constant 0 : index
    %c0_2 = arith.constant 0 : index
    %1 = vector.load %arg2[%c0_1, %c0_2] : memref<1024x32xf32, #tpu.memory_space<vmem>>, vector<1024x32xf32>
    %cst = arith.constant dense<0.000000e+00> : vector<2x32xf32>
    %2 = tpu.matmul %0, %1, %cst {dimension_numbers = #tpu.dot_dimension_numbers<[1], [0], [0], [1], [0, 0, 1, 1], [], []>} : vector<2x1024xf32>, vector<1024x32xf32>, vector<2x32xf32> -> vector<2x32xf32>
    %c0_3 = arith.constant 0 : index
    %c0_4 = arith.constant 0 : index
    %3 = vector.load %arg3[%c0_3, %c0_4] : memref<1x32xf32, #tpu.memory_space<vmem>>, vector<1x32xf32>
    %4 = vector.broadcast %3 : vector<1x32xf32> to vector<2x32xf32>
    %5 = arith.addf %2, %4 : vector<2x32xf32>
    %c0_5 = arith.constant 0 : index
    %c0_6 = arith.constant 0 : index
    %6 = vector.load %arg4[%c0_5, %c0_6] : memref<32x8xf32, #tpu.memory_space<vmem>>, vector<32x8xf32>
    %cst_7 = arith.constant dense<0.000000e+00> : vector<2x8xf32>
    %7 = tpu.matmul %5, %6, %cst_7 {dimension_numbers = #tpu.dot_dimension_numbers<[1], [0], [0], [1], [0, 0, 1, 1], [], []>} : vector<2x32xf32>, vector<32x8xf32>, vector<2x8xf32> -> vector<2x8xf32>
    %c0_8 = arith.constant 0 : index
    %c0_9 = arith.constant 0 : index
    %8 = vector.load %arg5[%c0_8, %c0_9] : memref<1x8xf32, #tpu.memory_space<vmem>>, vector<1x8xf32>
    %9 = vector.broadcast %8 : vector<1x8xf32> to vector<2x8xf32>
    %10 = arith.addf %7, %9 : vector<2x8xf32>
    %c0_10 = arith.constant 0 : index
    %c0_11 = arith.constant 0 : index
    %11 = vector.load %arg6[%c0_10, %c0_11] : memref<2x8xf32, #tpu.memory_space<vmem>>, vector<2x8xf32>
    tpu.vector_store %arg6[%c0_10, %c0_11], %10 {strides = array<i32>} : memref<2x8xf32, #tpu.memory_space<vmem>>, vector<2x8xf32>,
    return
  }
  func.func @transform_0(%arg0: i32) -> (i32, i32) {
    %c0_i32 = arith.constant 0 : i32
    %c0_i32_0 = arith.constant 0 : i32
    return %arg0, %c0_i32 : i32, i32
  }
  func.func @transform_1(%arg0: i32) -> (i32, i32) {
    %c0_i32 = arith.constant 0 : i32
    %c0_i32_0 = arith.constant 0 : i32
    %c0_i32_1 = arith.constant 0 : i32
    return %c0_i32, %c0_i32_0 : i32, i32
  }
  func.func @transform_2(%arg0: i32) -> (i32, i32) {
    %c0_i32 = arith.constant 0 : i32
    %c0_i32_0 = arith.constant 0 : i32
    %c0_i32_1 = arith.constant 0 : i32
    return %c0_i32, %c0_i32_0 : i32, i32
  }
  func.func @transform_3(%arg0: i32) -> (i32, i32) {
    %c0_i32 = arith.constant 0 : i32
    %c0_i32_0 = arith.constant 0 : i32
    %c0_i32_1 = arith.constant 0 : i32
    return %c0_i32, %c0_i32_0 : i32, i32
  }
  func.func @transform_4(%arg0: i32) -> (i32, i32) {
    %c0_i32 = arith.constant 0 : i32
    %c0_i32_0 = arith.constant 0 : i32
    %c0_i32_1 = arith.constant 0 : i32
    return %c0_i32, %c0_i32_0 : i32, i32
  }
  func.func @transform_5(%arg0: i32) -> (i32, i32) {
    %c0_i32 = arith.constant 0 : i32
    %c0_i32_0 = arith.constant 0 : i32
    return %arg0, %c0_i32 : i32, i32
  }
}

</mosaic_0001>

<bundles_post_ra>
// kernel: tpu_custom_call.1
= control target key start
LH: loop header
LB: loop body
LE: loop exit
PB: predicated region body
PF: predicated region fallthrough
CT: control target
= control target key end

     0   :  { %s858_s0 = inlined_call_operand.vmem [shape: f32[2,1024], index: 0, kind: input, shape index: {}]   ;;  %s859_s1 = inlined_call_operand.vmem [shape: f32[1024,32], index: 1, kind: input, shape index: {}]   ;;  %s860_s2 = inlined_call_operand.vmem [shape: f32[1,32], index: 2, kind: input, shape index: {}]   ;;  %s861_s3 = inlined_call_operand.vmem [shape: f32[32,8], index: 3, kind: input, shape index: {}]   ;;  %s862_s4 = inlined_call_operand.vmem [shape: f32[1,8], index: 4, kind: input, shape index: {}]   ;;  %s863_s5 = inlined_call_operand.hbm [shape: f32[2,8], index: 5, kind: output, shape index: {}]  }
   0x1   :  { %v70_v0 = vld [vmem:[%s859_s1 + $0x178] sm:$0xff]  ;;  %v69_v2 = vld [vmem:[%s859_s1 + $0x170] sm:$0xff]  ;;  %v68_v6 = vld [vmem:[%s859_s1 + $0x168] sm:$0xff] }
   0x2   :  { %v38_v1 = vld [vmem:[%s859_s1 + $0x78] sm:$0xff]  ;;  %216 = vmatpush.msra.mxu2 %v70_v0  ;;  %v37_v4 = vld [vmem:[%s859_s1 + $0x70] sm:$0xff]  ;;  %v36_v8 = vld [vmem:[%s859_s1 + $0x68] sm:$0xff] }
   0x3   :  { %176 = vmatpush.msra.mxu0 %v38_v1  ;;  %v86_v3 = vld [vmem:[%s859_s1 + $0x1f8] sm:$0xff]  ;;  %v85_v7 = vld [vmem:[%s859_s1 + $0x1f0] sm:$0xff]  ;;  %v84_v10 = vld [vmem:[%s859_s1 + $0x1e8] sm:$0xff] }
   0x4   :  { %v54_v5 = vld [vmem:[%s859_s1 + $0xf8] sm:$0xff]  ;;  %236 = vmatpush.msra.mxu3 %v86_v3  ;;  %217 = vmatpush.msra.mxu2 %v69_v2  ;;  %v53_v9 = vld [vmem:[%s859_s1 + $0xf0] sm:$0xff]  ;;  %v67_v11 = vld [vmem:[%s859_s1 + $0x160] sm:$0xff] }
   0x5   :  { %196 = vmatpush.msra.mxu1 %v54_v5  ;;  %177 = vmatpush.msra.mxu0 %v37_v4  ;;  %v35_v12 = vld [vmem:[%s859_s1 + $0x60] sm:$0xff]  ;;  %v52_v13 = vld [vmem:[%s859_s1 + $0xe8] sm:$0xff]  ;;  %v66_v16 = vld [vmem:[%s859_s1 + $0x158] sm:$0xff] }
   0x6   :  { %237 = vmatpush.msra.mxu3 %v85_v7  ;;  %218 = vmatpush.msra.mxu2 %v68_v6  ;;  %v83_v14 = vld [vmem:[%s859_s1 + $0x1e0] sm:$0xff]  ;;  %v34_v17 = vld [vmem:[%s859_s1 + $0x58] sm:$0xff]  ;;  %v65_v20 = vld [vmem:[%s859_s1 + $0x150] sm:$0xff] }
   0x7   :  { %197 = vmatpush.msra.mxu1 %v53_v9  ;;  %178 = vmatpush.msra.mxu0 %v36_v8  ;;  %v51_v15 = vld [vmem:[%s859_s1 + $0xe0] sm:$0xff]  ;;  %v82_v18 = vld [vmem:[%s859_s1 + $0x1d8] sm:$0xff]  ;;  %v33_v21 = vld [vmem:[%s859_s1 + $0x50] sm:$0xff] }
   0x8   :  { %238 = vmatpush.msra.mxu3 %v84_v10  ;;  %219 = vmatpush.msra.mxu2 %v67_v11  ;;  %v50_v19 = vld [vmem:[%s859_s1 + $0xd8] sm:$0xff]  ;;  %v81_v22 = vld [vmem:[%s859_s1 + $0x1d0] sm:$0xff]  ;;  %v64_v24 = vld [vmem:[%s859_s1 + $0x148] sm:$0xff] }
   0x9   :  { %198 = vmatpush.msra.mxu1 %v52_v13  ;;  %179 = vmatpush.msra.mxu0 %v35_v12  ;;  %v49_v23 = vld [vmem:[%s859_s1 + $0xd0] sm:$0xff]  ;;  %v32_v25 = vld [vmem:[%s859_s1 + $0x48] sm:$0xff]  ;;  %v63_v28 = vld [vmem:[%s859_s1 + $0x140] sm:$0xff] }
   0xa   :  { %239 = vmatpush.msra.mxu3 %v83_v14  ;;  %220 = vmatpush.msra.mxu2 %v66_v16  ;;  %v80_v26 = vld [vmem:[%s859_s1 + $0x1c8] sm:$0xff]  ;;  %v31_v29 = vld [vmem:[%s859_s1 + $0x40] sm:$0xff]  ;;  %v62_v32 = vld [vmem:[%s859_s1 + $0x138] sm:$0xff] }
   0xb   :  { %199 = vmatpush.msra.mxu1 %v51_v15  ;;  %180 = vmatpush.msra.mxu0 %v34_v17  ;;  %v48_v27 = vld [vmem:[%s859_s1 + $0xc8] sm:$0xff]  ;;  %v79_v30 = vld [vmem:[%s859_s1 + $0x1c0] sm:$0xff]  ;;  %v30_v33 = vld [vmem:[%s859_s1 + $0x38] sm:$0xff] }
   0xc   :  { %240 = vmatpush.msra.mxu3 %v82_v18  ;;  %221 = vmatpush.msra.mxu2 %v65_v20  ;;  %v47_v31 = vld [vmem:[%s859_s1 + $0xc0] sm:$0xff]  ;;  %v78_v34 = vld [vmem:[%s859_s1 + $0x1b8] sm:$0xff]  ;;  %v61_v36 = vld [vmem:[%s859_s1 + $0x130] sm:$0xff] }
   0xd   :  { %200 = vmatpush.msra.mxu1 %v50_v19  ;;  %181 = vmatpush.msra.mxu0 %v33_v21  ;;  %v46_v35 = vld [vmem:[%s859_s1 + $0xb8] sm:$0xff]  ;;  %v29_v37 = vld [vmem:[%s859_s1 + $0x30] sm:$0xff]  ;;  %v60_v40 = vld [vmem:[%s859_s1 + $0x128] sm:$0xff] }
   0xe   :  { %241 = vmatpush.msra.mxu3 %v81_v22  ;;  %222 = vmatpush.msra.mxu2 %v64_v24  ;;  %v77_v38 = vld [vmem:[%s859_s1 + $0x1b0] sm:$0xff]  ;;  %v28_v41 = vld [vmem:[%s859_s1 + $0x28] sm:$0xff]  ;;  %v59_v44 = vld [vmem:[%s859_s1 + $0x120] sm:$0xff] }
   0xf   :  { %201 = vmatpush.msra.mxu1 %v49_v23  ;;  %182 = vmatpush.msra.mxu0 %v32_v25  ;;  %v45_v39 = vld [vmem:[%s859_s1 + $0xb0] sm:$0xff]  ;;  %v76_v42 = vld [vmem:[%s859_s1 + $0x1a8] sm:$0xff]  ;;  %v27_v45 = vld [vmem:[%s859_s1 + $0x20] sm:$0xff] }
  0x10   :  { %242 = vmatpush.msra.mxu3 %v80_v26  ;;  %223 = vmatpush.msra.mxu2 %v63_v28  ;;  %v44_v43 = vld [vmem:[%s859_s1 + $0xa8] sm:$0xff]  ;;  %v75_v46 = vld [vmem:[%s859_s1 + $0x1a0] sm:$0xff]  ;;  %v58_v48 = vld [vmem:[%s859_s1 + $0x118] sm:$0xff] }
  0x11   :  { %202 = vmatpush.msra.mxu1 %v48_v27  ;;  %183 = vmatpush.msra.mxu0 %v31_v29  ;;  %v43_v47 = vld [vmem:[%s859_s1 + $0xa0] sm:$0xff]  ;;  %v26_v49 = vld [vmem:[%s859_s1 + $0x18] sm:$0xff]  ;;  %v57_v52 = vld [vmem:[%s859_s1 + $0x110] sm:$0xff] }
  0x12   :  { %243 = vmatpush.msra.mxu3 %v79_v30  ;;  %224 = vmatpush.msra.mxu2 %v62_v32  ;;  %v74_v50 = vld [vmem:[%s859_s1 + $0x198] sm:$0xff]  ;;  %v25_v53 = vld [vmem:[%s859_s1 + $0x10] sm:$0xff]  ;;  %v56_v56 = vld [vmem:[%s859_s1 + $0x108] sm:$0xff] }
  0x13   :  { %203 = vmatpush.msra.mxu1 %v47_v31  ;;  %184 = vmatpush.msra.mxu0 %v30_v33  ;;  %v42_v51 = vld [vmem:[%s859_s1 + $0x98] sm:$0xff]  ;;  %v73_v54 = vld [vmem:[%s859_s1 + $0x190] sm:$0xff]  ;;  %v24_v57 = vld [vmem:[%s859_s1 + $0x8] sm:$0xff] }
  0x14   :  { %244 = vmatpush.msra.mxu3 %v78_v34  ;;  %225 = vmatpush.msra.mxu2 %v61_v36  ;;  %v41_v55 = vld [vmem:[%s859_s1 + $0x90] sm:$0xff]  ;;  %v72_v58 = vld [vmem:[%s859_s1 + $0x188] sm:$0xff]  ;;  %v55_v60 = vld [vmem:[%s859_s1 + $0x100] sm:$0xff] }
  0x15   :  { %204 = vmatpush.msra.mxu1 %v46_v35  ;;  %185 = vmatpush.msra.mxu0 %v29_v37  ;;  %v40_v59 = vld [vmem:[%s859_s1 + $0x88] sm:$0xff]  ;;  %v23_v61 = vld [vmem:[%s859_s1] sm:$0xff]  ;;  %v134_v62 = vld [vmem:[%s859_s1 + $0x378] sm:$0xff] }
  0x16   :  { %245 = vmatpush.msra.mxu3 %v77_v38  ;;  %226 = vmatpush.msra.mxu2 %v60_v40  ;;  %v71_v63 = vld [vmem:[%s859_s1 + $0x180] sm:$0xff]  ;;  %v102_v0 = vld [vmem:[%s859_s1 + $0x278] sm:$0xff]  ;;  %v133_v2 = vld [vmem:[%s859_s1 + $0x370] sm:$0xff] }
  0x17   :  { %205 = vmatpush.msra.mxu1 %v45_v39  ;;  %186 = vmatpush.msra.mxu0 %v28_v41  ;;  %v150_v1 = vld [vmem:[%s859_s1 + $0x3f8] sm:$0xff]  ;;  %v39_v3 = vld [vmem:[%s859_s1 + $0x80] sm:$0xff]  ;;  %v101_v4 = vld [vmem:[%s859_s1 + $0x270] sm:$0xff] }
  0x18   :  { %246 = vmatpush.msra.mxu3 %v76_v42  ;;  %227 = vmatpush.msra.mxu2 %v59_v44  ;;  %v118_v5 = vld [vmem:[%s859_s1 + $0x2f8] sm:$0xff]  ;;  %v132_v6 = vld [vmem:[%s859_s1 + $0x368] sm:$0xff]  ;;  %v149_v7 = vld [vmem:[%s859_s1 + $0x3f0] sm:$0xff] }
  0x19   :  { %206 = vmatpush.msra.mxu1 %v44_v43  ;;  %187 = vmatpush.msra.mxu0 %v27_v45  ;;  %v100_v8 = vld [vmem:[%s859_s1 + $0x268] sm:$0xff]  ;;  %v117_v9 = vld [vmem:[%s859_s1 + $0x2f0] sm:$0xff]  ;;  %v131_v10 = vld [vmem:[%s859_s1 + $0x360] sm:$0xff] }
  0x1a   :  { %247 = vmatpush.msra.mxu3 %v75_v46  ;;  %228 = vmatpush.msra.mxu2 %v58_v48  ;;  %v148_v11 = vld [vmem:[%s859_s1 + $0x3e8] sm:$0xff]  ;;  %v99_v12 = vld [vmem:[%s859_s1 + $0x260] sm:$0xff]  ;;  %v130_v15 = vld [vmem:[%s859_s1 + $0x358] sm:$0xff] }
  0x1b   :  { %207 = vmatpush.msra.mxu1 %v43_v47  ;;  %188 = vmatpush.msra.mxu0 %v26_v49  ;;  %v116_v13 = vld [vmem:[%s859_s1 + $0x2e8] sm:$0xff]  ;;  %v21_v14 = vld [vmem:[%s858_s0] sm:$0xff]  ;;  %v98_v17 = vld [vmem:[%s859_s1 + $0x258] sm:$0xff] }
  0x1c   :  { %248 = vmatpush.msra.mxu3 %v74_v50  ;;  %229 = vmatpush.msra.mxu2 %v57_v52  ;;  %v147_v16 = vld [vmem:[%s859_s1 + $0x3e0] sm:$0xff]  ;;  %157 = vst [vmem:[#allocation1] ss:$4 sm:$0xff] %v21_v14  ;;  %v129_v19 = vld [vmem:[%s859_s1 + $0x350] sm:$0xff]  ;;  %v146_v20 = vld [vmem:[%s859_s1 + $0x3d8] sm:$0xff] }
  0x1d   :  { %208 = vmatpush.msra.mxu1 %v42_v51  ;;  %189 = vmatpush.msra.mxu0 %v25_v53  ;;  %v115_v18 = vld [vmem:[%s859_s1 + $0x2e0] sm:$0xff]  ;;  %v97_v21 = vld [vmem:[%s859_s1 + $0x250] sm:$0xff]  ;;  %v114_v22 = vld [vmem:[%s859_s1 + $0x2d8] sm:$0xff] }
  0x1e   :  { %249 = vmatpush.msra.mxu3 %v73_v54  ;;  %230 = vmatpush.msra.mxu2 %v56_v56  ;;  %v128_v23 = vld [vmem:[%s859_s1 + $0x348] sm:$0xff]  ;;  %v145_v24 = vld [vmem:[%s859_s1 + $0x3d0] sm:$0xff]  ;;  %v127_v28 = vld [vmem:[%s859_s1 + $0x340] sm:$0xff] }
  0x1f   :  { %209 = vmatpush.msra.mxu1 %v41_v55  ;;  %190 = vmatpush.msra.mxu0 %v24_v57  ;;  %v22_v25 = vld [vmem:[%s858_s0 + $0x8] sm:$0xff]  ;;  %v113_v27 = vld [vmem:[%s859_s1 + $0x2d0] sm:$0xff]  ;;  %v95_v30 = vld [vmem:[%s859_s1 + $0x240] sm:$0xff] }
  0x20   :  { %250 = vmatpush.msra.mxu3 %v72_v58  ;;  %231 = vmatpush.msra.mxu2 %v55_v60  ;;  %v96_v26 = vld [vmem:[%s859_s1 + $0x248] sm:$0xff]  ;;  %159 = vst [vmem:[#allocation1 + $0x20] ss:$4 sm:$0xff] %v22_v25  ;;  %v126_v32 = vld [vmem:[%s859_s1 + $0x338] sm:$0xff]  ;;  %v143_v33 = vld [vmem:[%s859_s1 + $0x3c0] sm:$0xff] }
  0x21   :  { %210 = vmatpush.msra.mxu1 %v40_v59  ;;  %191 = vmatpush.msra.mxu0 %v23_v61  ;;  %v144_v29 = vld [vmem:[%s859_s1 + $0x3c8] sm:$0xff]  ;;  %v94_v34 = vld [vmem:[%s859_s1 + $0x238] sm:$0xff]  ;;  %v111_v35 = vld [vmem:[%s859_s1 + $0x2c0] sm:$0xff] }
  0x22   :  { %296 = vmatpush.msrb.mxu2 %v134_v62  ;;  %251 = vmatpush.msra.mxu3 %v71_v63  ;;  %v112_v31 = vld [vmem:[%s859_s1 + $0x2c8] sm:$0xff] }
  0x23   :  { %256 = vmatpush.msrb.mxu0 %v102_v0  ;;  %211 = vmatpush.msra.mxu1 %v39_v3 }
  0x24   :  { %316 = vmatpush.msrb.mxu3 %v150_v1  ;;  %297 = vmatpush.msrb.mxu2 %v133_v2 }
  0x25   :  { %257 = vmatpush.msrb.mxu0 %v101_v4  ;;  %276 = vmatpush.msrb.mxu1 %v118_v5 }
  0x26   :  { %298 = vmatpush.msrb.mxu2 %v132_v6  ;;  %317 = vmatpush.msrb.mxu3 %v149_v7 }
  0x27   :  { %258 = vmatpush.msrb.mxu0 %v100_v8  ;;  %277 = vmatpush.msrb.mxu1 %v117_v9 }
  0x28   :  { %299 = vmatpush.msrb.mxu2 %v131_v10  ;;  %318 = vmatpush.msrb.mxu3 %v148_v11 }
  0x29   :  { %259 = vmatpush.msrb.mxu0 %v99_v12  ;;  %278 = vmatpush.msrb.mxu1 %v116_v13 }
  0x2a   :  { %300 = vmatpush.msrb.mxu2 %v130_v15  ;;  %319 = vmatpush.msrb.mxu3 %v147_v16 }
  0x2b   :  { %260 = vmatpush.msrb.mxu0 %v98_v17  ;;  %279 = vmatpush.msrb.mxu1 %v115_v18 }
  0x2c   :  { %301 = vmatpush.msrb.mxu2 %v129_v19  ;;  %320 = vmatpush.msrb.mxu3 %v146_v20 }
  0x2d   :  { %261 = vmatpush.msrb.mxu0 %v97_v21  ;;  %280 = vmatpush.msrb.mxu1 %v114_v22 }
  0x2e   :  { %302 = vmatpush.msrb.mxu2 %v128_v23  ;;  %321 = vmatpush.msrb.mxu3 %v145_v24 }
  0x2f   :  { %262 = vmatpush.msrb.mxu0 %v96_v26  ;;  %281 = vmatpush.msrb.mxu1 %v113_v27 }
  0x30   :  { %303 = vmatpush.msrb.mxu2 %v127_v28  ;;  %322 = vmatpush.msrb.mxu3 %v144_v29 }
  0x31   :  { %10 = vsyncpa [#allocation3], 0  ;;  %263 = vmatpush.msrb.mxu0 %v95_v30  ;;  %282 = vmatpush.msrb.mxu1 %v112_v31  ;;  %v125_v36 = vld [vmem:[%s859_s1 + $0x330] sm:$0xff]  ;;  %v142_v37 = vld [vmem:[%s859_s1 + $0x3b8] sm:$0xff]  ;;  %vm344_vm0 = vcmask 261120   ;;  %s416_s8 = smov [#allocation2]  }
  0x32   :  { %304 = vmatpush.msrb.mxu2 %v126_v32  ;;  %323 = vmatpush.msrb.mxu3 %v143_v33  ;;  %v93_v38 = vld [vmem:[%s859_s1 + $0x230] sm:$0xff]  ;;  %v110_v39 = vld [vmem:[%s859_s1 + $0x2b8] sm:$0xff]  ;;  %v124_v40 = vld [vmem:[%s859_s1 + $0x328] sm:$0xff]  ;;  %s375_s9 = sshll.u32 %s416_s8, 4  ;;  %s377_s12 = sshll.u32 %s863_s5, 4  ;;  %vm368_vm1 = vcmask 58368   ;;  %s376_s9 = int_to_ptr.vmem [resolvable:$true] %s375_s9  ;;  %s378_s12 = int_to_ptr.hbm [resolvable:$true] %s377_s12 }
  0x33   :  { %264 = vmatpush.msrb.mxu0 %v94_v34  ;;  %283 = vmatpush.msrb.mxu1 %v111_v35  ;;  %v141_v41 = vld [vmem:[%s859_s1 + $0x3b0] sm:$0xff]  ;;  %v92_v42 = vld [vmem:[%s859_s1 + $0x228] sm:$0xff]  ;;  %v123_v44 = vld [vmem:[%s859_s1 + $0x320] sm:$0xff] }
  0x34   :  { %305 = vmatpush.msrb.mxu2 %v125_v36  ;;  %324 = vmatpush.msrb.mxu3 %v142_v37  ;;  %v109_v43 = vld [vmem:[%s859_s1 + $0x2b0] sm:$0xff]  ;;  %v140_v45 = vld [vmem:[%s859_s1 + $0x3a8] sm:$0xff]  ;;  %v91_v47 = vld [vmem:[%s859_s1 + $0x220] sm:$0xff] }
  0x35   :  { %265 = vmatpush.msrb.mxu0 %v93_v38  ;;  %284 = vmatpush.msrb.mxu1 %v110_v39  ;;  %v162_v46 = vld.sshfl [vmem:[#allocation1 + $0x10] sm:$0xff pattern:$0x73625140]  ;;  %v108_v48 = vld [vmem:[%s859_s1 + $0x2a8] sm:$0xff]  ;;  %v122_v49 = vld [vmem:[%s859_s1 + $0x318] sm:$0xff] }
  0x36   :  { %306 = vmatpush.msrb.mxu2 %v124_v40  ;;  %325 = vmatpush.msrb.mxu3 %v141_v41  ;;  %v139_v50 = vld [vmem:[%s859_s1 + $0x3a0] sm:$0xff]  ;;  %v163_v52 = vld.sshfl [vmem:[#allocation1 + $0x18] sm:$0xff pattern:$0x73625140]  ;;  %v121_v55 = vld [vmem:[%s859_s1 + $0x310] sm:$0xff] }
  0x37   :  { %266 = vmatpush.msrb.mxu0 %v92_v42  ;;  %285 = vmatpush.msrb.mxu1 %v109_v43  ;;  %v160_v51 = vld.sshfl [vmem:[#allocation1] sm:$0xff pattern:$0x73625140]  ;;  %v90_v53 = vld [vmem:[%s859_s1 + $0x218] sm:$0xff]  ;;  %v89_v58 = vld [vmem:[%s859_s1 + $0x210] sm:$0xff] }
  0x38   :  { %307 = vmatpush.msrb.mxu2 %v123_v44  ;;  %326 = vmatpush.msrb.mxu3 %v140_v45  ;;  %v107_v54 = vld [vmem:[%s859_s1 + $0x2a0] sm:$0xff]  ;;  %v138_v56 = vld [vmem:[%s859_s1 + $0x398] sm:$0xff]  ;;  %v161_v57 = vld.sshfl [vmem:[#allocation1 + $0x8] sm:$0xff pattern:$0x73625140] }
  0x39   :  { %232 = vmatmul.f32.vlgmr.msra.gmra.mxu2 %v162_v46  ;;  %267 = vmatpush.msrb.mxu0 %v91_v47  ;;  %v106_v59 = vld [vmem:[%s859_s1 + $0x298] sm:$0xff]  ;;  %v120_v60 = vld [vmem:[%s859_s1 + $0x308] sm:$0xff]  ;;  %v137_v61 = vld [vmem:[%s859_s1 + $0x390] sm:$0xff] }
  0x3a   :  { %286 = vmatpush.msrb.mxu1 %v108_v48  ;;  %308 = vmatpush.msrb.mxu2 %v122_v49  ;;  %v88_v62 = vld [vmem:[%s859_s1 + $0x208] sm:$0xff]  ;;  %v105_v63 = vld [vmem:[%s859_s1 + $0x290] sm:$0xff]  ;;  %v119_v0 = vld [vmem:[%s859_s1 + $0x300] sm:$0xff] }
  0x3b   :  { %327 = vmatpush.msrb.mxu3 %v139_v50  ;;  %192 = vmatmul.f32.vlgmr.msra.gmra.mxu0 %v160_v51  ;;  %v136_v1 = vld [vmem:[%s859_s1 + $0x388] sm:$0xff]  ;;  %v166_v2 = vld.sshfl [vmem:[#allocation1 + $0x30] sm:$0xff pattern:$0x73625140]  ;;  %v87_v3 = vld [vmem:[%s859_s1 + $0x200] sm:$0xff] }
  0x3c   :  { %252 = vmatmul.f32.vlgmr.msra.gmra.mxu3 %v163_v52  ;;  %268 = vmatpush.msrb.mxu0 %v90_v53  ;;  %v104_v4 = vld [vmem:[%s859_s1 + $0x288] sm:$0xff]  ;;  %v135_v5 = vld [vmem:[%s859_s1 + $0x380] sm:$0xff]  ;;  %v167_v7 = vld.sshfl [vmem:[#allocation1 + $0x38] sm:$0xff pattern:$0x73625140] }
  0x3d   :  { %287 = vmatpush.msrb.mxu1 %v107_v54  ;;  %309 = vmatpush.msrb.mxu2 %v121_v55  ;;  %v164_v6 = vld.sshfl [vmem:[#allocation1 + $0x20] sm:$0xff pattern:$0x73625140]  ;;  %v165_v9 = vld.sshfl [vmem:[#allocation1 + $0x28] sm:$0xff pattern:$0x73625140] }
  0x3e   :  { %328 = vmatpush.msrb.mxu3 %v138_v56  ;;  %212 = vmatmul.f32.vlgmr.msra.gmra.mxu1 %v161_v57  ;;  %v103_v8 = vld [vmem:[%s859_s1 + $0x280] sm:$0xff]  ;;  %v339_v10 = vld [vmem:[%s861_s3 + $0x18] sm:$0xff]  ;;  %v338_v11 = vld [vmem:[%s861_s3 + $0x10] sm:$0xff] }
  0x3f   :  { %269 = vmatpush.msrb.mxu0 %v89_v58  ;;  %288 = vmatpush.msrb.mxu1 %v106_v59  ;;  %v337_v12 = vld [vmem:[%s861_s3 + $0x8] sm:$0xff]  ;;  %v336_v13 = vld [vmem:[%s861_s3] sm:$0xff] }
  0x40   :  { %310 = vmatpush.msrb.mxu2 %v120_v60  ;;  %329 = vmatpush.msrb.mxu3 %v137_v61  ;;  %v388_v14 = vld [vmem:[%s860_s2] ss:$0 sm:$0xff] }
  0x41   :  { %270 = vmatpush.msrb.mxu0 %v88_v62  ;;  %289 = vmatpush.msrb.mxu1 %v105_v63  ;;  %v389_v31 = vld [vmem:[%s862_s4] ss:$0 sm:$0xff] }
  0x42   :  { %311 = vmatpush.msrb.mxu2 %v119_v0  ;;  %330 = vmatpush.msrb.mxu3 %v136_v1 }
  0x43   :  { %312 = vmatmul.f32.vlgmr.msrb.gmra.mxu2 %v166_v2  ;;  %271 = vmatpush.msrb.mxu0 %v87_v3 }
  0x44   :  { %290 = vmatpush.msrb.mxu1 %v104_v4  ;;  %331 = vmatpush.msrb.mxu3 %v135_v5 }
  0x45   :  { %272 = vmatmul.f32.vlgmr.msrb.gmra.mxu0 %v164_v6  ;;  %332 = vmatmul.f32.vlgmr.msrb.gmra.mxu3 %v167_v7 }
  0x46   :  { %291 = vmatpush.msrb.mxu1 %v103_v8  ;;  %360 = vmatpush.msra.mxu0 %v339_v10 }
  0x47   :  { %292 = vmatmul.f32.vlgmr.msrb.gmra.mxu1 %v165_v9 }
  0x48   :  { %361 = vmatpush.msra.mxu0 %v338_v11 }
  0x4a   :  { %362 = vmatpush.msra.mxu0 %v337_v12 }
  0x4c   :  { %363 = vmatpush.msra.mxu0 %v336_v13 }
  0xb8   :  { %v193_v15 = vpop.f32.mrf.mxu0 }
  0xb9   :  { %v194_v16 = vadd.f32 %v388_v14, %v193_v15 }
  0xbb   :  { %v213_v17 = vpop.f32.mrf.mxu1 }
  0xbc   :  { %v214_v18 = vadd.f32 %v213_v17, %v194_v16  ;;  %v233_v19 = vpop.f32.mrf.mxu2 }
  0xbe   :  { %v234_v20 = vadd.f32 %v233_v19, %v214_v18 }
  0xbf   :  { %v253_v21 = vpop.f32.mrf.mxu3 }
  0xc0   :  { %v254_v22 = vadd.f32 %v253_v21, %v234_v20 }
  0xc2   :  { %v273_v23 = vpop.f32.mrf.mxu0 }
  0xc3   :  { %v274_v24 = vadd.f32 %v273_v23, %v254_v22 }
  0xc4   :  { %v293_v25 = vpop.f32.mrf.mxu1 }
  0xc5   :  { %v294_v26 = vadd.f32 %v293_v25, %v274_v24 }
  0xc6   :  { %v313_v27 = vpop.f32.mrf.mxu2 }
  0xc7   :  { %v314_v28 = vadd.f32 %v313_v27, %v294_v26 }
  0xc8   :  { %v333_v29 = vpop.f32.mrf.mxu3 }
  0xc9   :  { %v334_v30 = vadd.f32 %v333_v29, %v314_v28 }
  0xcb   :  { %386 = vmatmul.msk.f32.vlgmr.msra.gmra.mxu0 %vm344_vm0, %v334_v30 }
 0x148   :  { %v365_v32 = vpop.f32.mrf.mxu0 }
 0x149   :  { %v366_v33 = vadd.f32 %v389_v31, %v365_v32 }
 0x14b   :  { %369 = vst.msk [vmem:[#allocation2] sm:$0x3] %vm368_vm1, %v366_v33 }
 0x14c   :  { %380 = dma.vmem_to_hbm [thread:$0]  %s376_s9, 32, %s378_s12, [#allocation3]  }
 0x14d   :  { %414 = dma.done.wait [#allocation3], 32  }
 0x14e   :  { %415 = vsyncadd [#allocation3], 4294967264 }
 0x14f   :  { %385 = vsyncpa [#allocation3], 1 }

</bundles_post_ra>
